<compile_context>
chip_gen: v6e
topology: v6e:2x2x1
jax: 0.10.0
libtpu: 0.0.40
codegen_flags: <defaults>
</compile_context>

<pallas_src>
import jax
import jax.numpy as jnp
from jax.experimental import pallas as pl
from jax.experimental.pallas import tpu as pltpu

# small, shape-consistent config (configs.* in the original)
BATCH = 2          # batchsize
TIMESTEP = 8       # timestep
NUM_FACTOR = 16    # num_factor
EMBED_DIM = 32     # Embedding_size
K_SIZE = 5         # kernel size (must be 5 given padding=2, see note above)
PAD = 2


# ---------------------------------------------------------------------------
# Fused kernel:
#   emb    = x @ W_emb_padded + b_emb_padded          (MXU, lanes pre-padded)
#   zp     = emb zero-padded on the T axis            (VMEM scratch)
#   shift  = 5 lane-shifted copies of zp              (hoisted kj shifts)
#   conv   = sum_{ki,kj} w[ki,kj] * shift[kj][ki:ki+T]  (sublane-offset loads)
#   out    = relu(conv + b_conv) + emb                (residual)
# ---------------------------------------------------------------------------
def _cnn1_fused_kernel(x_ref, ew_ref, eb_ref, cw_ref, cb_ref,
                       o_ref, zp_ref, shift_ref):
    B, T, E = o_ref.shape

    # 1) embedding Linear. ew/eb are zero-padded by PAD columns on each side,
    #    so emb_pad already carries the conv's lane (E-axis) zero padding.
    emb_pad = (
        jnp.dot(x_ref[...], ew_ref[...], preferred_element_type=jnp.float32)
        + eb_ref[...]
    )                                             # (B*T, E + 2*PAD)

    # 2) zero-pad on the T (sublane) axis in VMEM: zp[b] == xpad[b] of the
    #    reference (rows 0,1,T+2,T+3 are zero, interior rows hold emb_pad).
    zp_ref[...] = jnp.zeros_like(zp_ref)
    for b in range(B):
        zp_ref[b, PAD:PAD + T, :] = emb_pad[b * T:(b + 1) * T, :]

    # 3) hoist the lane (kj) shift out of the 25-tap loop: 5 lane-offset
    #    loads total; everything after this is sublane addressing only.
    for kj in range(K_SIZE):
        shift_ref[kj] = zp_ref[:, :, kj:kj + E]   # (B, T+2*PAD, E)

    # 4) 25-tap conv; accumulator initialized with the first tap.
    acc = cw_ref[0] * shift_ref[0, :, 0:T, :]     # (B, T, E)
    for ki in range(K_SIZE):
        for kj in range(K_SIZE):
            if ki == 0 and kj == 0:
                continue
            acc = acc + cw_ref[ki * K_SIZE + kj] * shift_ref[kj, :, ki:ki + T, :]

    # 5) bias + ReLU + residual.  The residual (embedding_node) is exactly the
    #    interior of the kj=PAD shifted copy, so it is a plain aligned load.
    residual = shift_ref[PAD, :, PAD:PAD + T, :]  # (B, T, E) == emb
    o_ref[...] = jnp.maximum(acc + cb_ref[0], 0.0) + residual


# ---------------------------------------------------------------------------
# Wrapper (CNN1.forward)
# ---------------------------------------------------------------------------
def cnn1_forward(x, emb_w, emb_b, conv_w, conv_b):
    b, t, f = x.shape
    e = emb_w.shape[1]
    ep = e + 2 * PAD
    tp = t + 2 * PAD

    x2d = x.reshape(b * t, f)
    # zero-pad weight/bias columns -> embedding output is already lane-padded.
    ew_pad = jnp.pad(emb_w, ((0, 0), (PAD, PAD)))          # (F, E+4)
    eb_pad = jnp.pad(emb_b, ((PAD, PAD),)).reshape(1, ep)  # (1, E+4)
    cw_flat = conv_w.reshape(-1)                           # (25,) scalars

    return pl.pallas_call(
        _cnn1_fused_kernel,
        out_shape=jax.ShapeDtypeStruct((b, t, e), jnp.float32),
        in_specs=[
            pl.BlockSpec(memory_space=pltpu.MemorySpace.VMEM),  # x2d  (B*T, F)
            pl.BlockSpec(memory_space=pltpu.MemorySpace.VMEM),  # W    (F, E+4)
            pl.BlockSpec(memory_space=pltpu.MemorySpace.VMEM),  # b    (1, E+4)
            pl.BlockSpec(memory_space=pltpu.MemorySpace.SMEM),  # conv w (25,)
            pl.BlockSpec(memory_space=pltpu.MemorySpace.SMEM),  # conv b (1,)
        ],
        out_specs=pl.BlockSpec(memory_space=pltpu.MemorySpace.VMEM),
        scratch_shapes=[
            pltpu.VMEM((b, tp, ep), jnp.float32),          # zp (padded emb)
            pltpu.VMEM((K_SIZE, b, tp, e), jnp.float32),   # 5 lane-shifted copies
        ],
    )(x2d, ew_pad, eb_pad, cw_flat, conv_b)


# pure-JAX reference (same math) for a sanity check
def cnn1_reference(x, emb_w, emb_b, conv_w, conv_b):
    emb = jnp.einsum("btf,fe->bte", x, emb_w) + emb_b
    xpad = jnp.pad(emb, ((0, 0), (PAD, PAD), (PAD, PAD)))
    b, t, e = emb.shape
    acc = jnp.zeros_like(emb)
    for ki in range(K_SIZE):
        for kj in range(K_SIZE):
            acc = acc + conv_w[ki, kj] * xpad[:, ki:ki + t, kj:kj + e]
    return jnp.maximum(acc + conv_b[0], 0.0) + emb


if __name__ == "__main__":
    key = jax.random.PRNGKey(0)
    k_x, k_ew, k_eb, k_cw, k_cb = jax.random.split(key, 5)

    x = jax.random.normal(k_x, (BATCH, TIMESTEP, NUM_FACTOR), jnp.float32)

    # deterministic parameter init (shapes from __init__)
    emb_w = jax.random.normal(k_ew, (NUM_FACTOR, EMBED_DIM), jnp.float32) * 0.1
    emb_b = jax.random.normal(k_eb, (EMBED_DIM,), jnp.float32) * 0.1
    conv_w = jax.random.normal(k_cw, (K_SIZE, K_SIZE), jnp.float32) * 0.1
    conv_b = jax.random.normal(k_cb, (1,), jnp.float32) * 0.1

    out = cnn1_forward(x, emb_w, emb_b, conv_w, conv_b)
    jax.block_until_ready(out)

    ref = cnn1_reference(x, emb_w, emb_b, conv_w, conv_b)
    assert out.shape == (BATCH, TIMESTEP, EMBED_DIM)
    assert jnp.allclose(out, ref, atol=1e-5, rtol=1e-5)

    print("KERNEL_OK")
</pallas_src>

<mosaic_0001>
module attributes {stable_mosaic.version = 11 : i64} {
  func.func @_cnn1_fused_kernel(%arg0: memref<16x16xf32, #tpu.memory_space<vmem>>, %arg1: memref<16x36xf32, #tpu.memory_space<vmem>>, %arg2: memref<1x36xf32, #tpu.memory_space<vmem>>, %arg3: memref<25xf32, #tpu.memory_space<smem>>, %arg4: memref<1xf32, #tpu.memory_space<smem>>, %arg5: memref<2x8x32xf32, #tpu.memory_space<vmem>>, %arg6: memref<2x12x36xf32, #tpu.memory_space<vmem>>, %arg7: memref<5x2x12x32xf32, #tpu.memory_space<vmem>>) attributes {dimension_semantics = [], scalar_prefetch = 0 : i64, scratch_operands = 2 : i64, tpu.core_type = #tpu.core_type<tc>} {
    %c0 = arith.constant 0 : index
    %c0_0 = arith.constant 0 : index
    %0 = vector.load %arg0[%c0, %c0_0] : memref<16x16xf32, #tpu.memory_space<vmem>>, vector<16x16xf32>
    %c0_1 = arith.constant 0 : index
    %c0_2 = arith.constant 0 : index
    %1 = vector.load %arg1[%c0_1, %c0_2] : memref<16x36xf32, #tpu.memory_space<vmem>>, vector<16x36xf32>
    %cst = arith.constant dense<0.000000e+00> : vector<16x36xf32>
    %2 = tpu.matmul %0, %1, %cst {dimension_numbers = #tpu.dot_dimension_numbers<[1], [0], [0], [1], [0, 0, 1, 1], [], []>} : vector<16x16xf32>, vector<16x36xf32>, vector<16x36xf32> -> vector<16x36xf32>
    %c0_3 = arith.constant 0 : index
    %c0_4 = arith.constant 0 : index
    %3 = vector.load %arg2[%c0_3, %c0_4] : memref<1x36xf32, #tpu.memory_space<vmem>>, vector<1x36xf32>
    %4 = vector.broadcast %3 : vector<1x36xf32> to vector<16x36xf32>
    %5 = arith.addf %2, %4 : vector<16x36xf32>
    %cst_5 = arith.constant 0.000000e+00 : f32
    %6 = vector.broadcast %cst_5 : f32 to vector<2x12x36xf32>
    %c0_6 = arith.constant 0 : index
    %c0_7 = arith.constant 0 : index
    %c0_8 = arith.constant 0 : index
    %7 = vector.load %arg6[%c0_6, %c0_7, %c0_8] : memref<2x12x36xf32, #tpu.memory_space<vmem>>, vector<2x12x36xf32>
    tpu.vector_store %arg6[%c0_6, %c0_7, %c0_8], %6 {strides = array<i32>} : memref<2x12x36xf32, #tpu.memory_space<vmem>>, vector<2x12x36xf32>,
    %8 = vector.extract_strided_slice %5 {offsets = [0, 0], sizes = [8, 36], strides = [1, 1]} : vector<16x36xf32> to vector<8x36xf32>
    %c0_9 = arith.constant 0 : index
    %c2 = arith.constant 2 : index
    %c0_10 = arith.constant 0 : index
    %9 = vector.load %arg6[%c0_9, %c2, %c0_10] : memref<2x12x36xf32, #tpu.memory_space<vmem>>, vector<1x8x36xf32>
    %10 = vector.shape_cast %9 : vector<1x8x36xf32> to vector<8x36xf32>
    %11 = vector.shape_cast %8 : vector<8x36xf32> to vector<1x8x36xf32>
    tpu.vector_store %arg6[%c0_9, %c2, %c0_10], %11 {strides = array<i32>} : memref<2x12x36xf32, #tpu.memory_space<vmem>>, vector<1x8x36xf32>,
    %12 = vector.extract_strided_slice %5 {offsets = [8, 0], sizes = [8, 36], strides = [1, 1]} : vector<16x36xf32> to vector<8x36xf32>
    %c1 = arith.constant 1 : index
    %c2_11 = arith.constant 2 : index
    %c0_12 = arith.constant 0 : index
    %13 = vector.load %arg6[%c1, %c2_11, %c0_12] : memref<2x12x36xf32, #tpu.memory_space<vmem>>, vector<1x8x36xf32>
    %14 = vector.shape_cast %13 : vector<1x8x36xf32> to vector<8x36xf32>
    %15 = vector.shape_cast %12 : vector<8x36xf32> to vector<1x8x36xf32>
    tpu.vector_store %arg6[%c1, %c2_11, %c0_12], %15 {strides = array<i32>} : memref<2x12x36xf32, #tpu.memory_space<vmem>>, vector<1x8x36xf32>,
    %c0_13 = arith.constant 0 : index
    %c0_14 = arith.constant 0 : index
    %c0_15 = arith.constant 0 : index
    %16 = vector.load %arg6[%c0_13, %c0_14, %c0_15] : memref<2x12x36xf32, #tpu.memory_space<vmem>>, vector<2x12x32xf32>
    %c0_16 = arith.constant 0 : index
    %c0_17 = arith.constant 0 : index
    %c0_18 = arith.constant 0 : index
    %c0_19 = arith.constant 0 : index
    %17 = vector.load %arg7[%c0_16, %c0_17, %c0_18, %c0_19] : memref<5x2x12x32xf32, #tpu.memory_space<vmem>>, vector<1x2x12x32xf32>
    %18 = vector.shape_cast %17 : vector<1x2x12x32xf32> to vector<2x12x32xf32>
    %19 = vector.shape_cast %16 : vector<2x12x32xf32> to vector<1x2x12x32xf32>
    tpu.vector_store %arg7[%c0_16, %c0_17, %c0_18, %c0_19], %19 {strides = array<i32>} : memref<5x2x12x32xf32, #tpu.memory_space<vmem>>, vector<1x2x12x32xf32>,
    %c0_20 = arith.constant 0 : index
    %c0_21 = arith.constant 0 : index
    %c1_22 = arith.constant 1 : index
    %20 = vector.load %arg6[%c0_20, %c0_21, %c1_22] : memref<2x12x36xf32, #tpu.memory_space<vmem>>, vector<2x12x32xf32>
    %c1_23 = arith.constant 1 : index
    %c0_24 = arith.constant 0 : index
    %c0_25 = arith.constant 0 : index
    %c0_26 = arith.constant 0 : index
    %21 = vector.load %arg7[%c1_23, %c0_24, %c0_25, %c0_26] : memref<5x2x12x32xf32, #tpu.memory_space<vmem>>, vector<1x2x12x32xf32>
    %22 = vector.shape_cast %21 : vector<1x2x12x32xf32> to vector<2x12x32xf32>
    %23 = vector.shape_cast %20 : vector<2x12x32xf32> to vector<1x2x12x32xf32>
    tpu.vector_store %arg7[%c1_23, %c0_24, %c0_25, %c0_26], %23 {strides = array<i32>} : memref<5x2x12x32xf32, #tpu.memory_space<vmem>>, vector<1x2x12x32xf32>,
    %c0_27 = arith.constant 0 : index
    %c0_28 = arith.constant 0 : index
    %c2_29 = arith.constant 2 : index
    %24 = vector.load %arg6[%c0_27, %c0_28, %c2_29] : memref<2x12x36xf32, #tpu.memory_space<vmem>>, vector<2x12x32xf32>
    %c2_30 = arith.constant 2 : index
    %c0_31 = arith.constant 0 : index
    %c0_32 = arith.constant 0 : index
    %c0_33 = arith.constant 0 : index
    %25 = vector.load %arg7[%c2_30, %c0_31, %c0_32, %c0_33] : memref<5x2x12x32xf32, #tpu.memory_space<vmem>>, vector<1x2x12x32xf32>
    %26 = vector.shape_cast %25 : vector<1x2x12x32xf32> to vector<2x12x32xf32>
    %27 = vector.shape_cast %24 : vector<2x12x32xf32> to vector<1x2x12x32xf32>
    tpu.vector_store %arg7[%c2_30, %c0_31, %c0_32, %c0_33], %27 {strides = array<i32>} : memref<5x2x12x32xf32, #tpu.memory_space<vmem>>, vector<1x2x12x32xf32>,
    %c0_34 = arith.constant 0 : index
    %c0_35 = arith.constant 0 : index
    %c3 = arith.constant 3 : index
    %28 = vector.load %arg6[%c0_34, %c0_35, %c3] : memref<2x12x36xf32, #tpu.memory_space<vmem>>, vector<2x12x32xf32>
    %c3_36 = arith.constant 3 : index
    %c0_37 = arith.constant 0 : index
    %c0_38 = arith.constant 0 : index
    %c0_39 = arith.constant 0 : index
    %29 = vector.load %arg7[%c3_36, %c0_37, %c0_38, %c0_39] : memref<5x2x12x32xf32, #tpu.memory_space<vmem>>, vector<1x2x12x32xf32>
    %30 = vector.shape_cast %29 : vector<1x2x12x32xf32> to vector<2x12x32xf32>
    %31 = vector.shape_cast %28 : vector<2x12x32xf32> to vector<1x2x12x32xf32>
    tpu.vector_store %arg7[%c3_36, %c0_37, %c0_38, %c0_39], %31 {strides = array<i32>} : memref<5x2x12x32xf32, #tpu.memory_space<vmem>>, vector<1x2x12x32xf32>,
    %c0_40 = arith.constant 0 : index
    %c0_41 = arith.constant 0 : index
    %c4 = arith.constant 4 : index
    %32 = vector.load %arg6[%c0_40, %c0_41, %c4] : memref<2x12x36xf32, #tpu.memory_space<vmem>>, vector<2x12x32xf32>
    %c4_42 = arith.constant 4 : index
    %c0_43 = arith.constant 0 : index
    %c0_44 = arith.constant 0 : index
    %c0_45 = arith.constant 0 : index
    %33 = vector.load %arg7[%c4_42, %c0_43, %c0_44, %c0_45] : memref<5x2x12x32xf32, #tpu.memory_space<vmem>>, vector<1x2x12x32xf32>
    %34 = vector.shape_cast %33 : vector<1x2x12x32xf32> to vector<2x12x32xf32>
    %35 = vector.shape_cast %32 : vector<2x12x32xf32> to vector<1x2x12x32xf32>
    tpu.vector_store %arg7[%c4_42, %c0_43, %c0_44, %c0_45], %35 {strides = array<i32>} : memref<5x2x12x32xf32, #tpu.memory_space<vmem>>, vector<1x2x12x32xf32>,
    %c0_46 = arith.constant 0 : index
    %36 = memref.load %arg3[%c0_46] : memref<25xf32, #tpu.memory_space<smem>>
    %c0_47 = arith.constant 0 : index
    %c0_48 = arith.constant 0 : index
    %c0_49 = arith.constant 0 : index
    %c0_50 = arith.constant 0 : index
    %37 = vector.load %arg7[%c0_47, %c0_48, %c0_49, %c0_50] : memref<5x2x12x32xf32, #tpu.memory_space<vmem>>, vector<1x2x8x32xf32>
    %38 = vector.shape_cast %37 : vector<1x2x8x32xf32> to vector<2x8x32xf32>
    %39 = vector.broadcast %36 : f32 to vector<2x8x32xf32>
    %40 = arith.mulf %39, %38 : vector<2x8x32xf32>
    %c1_51 = arith.constant 1 : index
    %41 = memref.load %arg3[%c1_51] : memref<25xf32, #tpu.memory_space<smem>>
    %c1_52 = arith.constant 1 : index
    %c0_53 = arith.constant 0 : index
    %c0_54 = arith.constant 0 : index
    %c0_55 = arith.constant 0 : index
    %42 = vector.load %arg7[%c1_52, %c0_53, %c0_54, %c0_55] : memref<5x2x12x32xf32, #tpu.memory_space<vmem>>, vector<1x2x8x32xf32>
    %43 = vector.shape_cast %42 : vector<1x2x8x32xf32> to vector<2x8x32xf32>
    %44 = vector.broadcast %41 : f32 to vector<2x8x32xf32>
    %45 = arith.mulf %44, %43 : vector<2x8x32xf32>
    %46 = arith.addf %40, %45 : vector<2x8x32xf32>
    %c2_56 = arith.constant 2 : index
    %47 = memref.load %arg3[%c2_56] : memref<25xf32, #tpu.memory_space<smem>>
    %c2_57 = arith.constant 2 : index
    %c0_58 = arith.constant 0 : index
    %c0_59 = arith.constant 0 : index
    %c0_60 = arith.constant 0 : index
    %48 = vector.load %arg7[%c2_57, %c0_58, %c0_59, %c0_60] : memref<5x2x12x32xf32, #tpu.memory_space<vmem>>, vector<1x2x8x32xf32>
    %49 = vector.shape_cast %48 : vector<1x2x8x32xf32> to vector<2x8x32xf32>
    %50 = vector.broadcast %47 : f32 to vector<2x8x32xf32>
    %51 = arith.mulf %50, %49 : vector<2x8x32xf32>
    %52 = arith.addf %46, %51 : vector<2x8x32xf32>
    %c3_61 = arith.constant 3 : index
    %53 = memref.load %arg3[%c3_61] : memref<25xf32, #tpu.memory_space<smem>>
    %c3_62 = arith.constant 3 : index
    %c0_63 = arith.constant 0 : index
    %c0_64 = arith.constant 0 : index
    %c0_65 = arith.constant 0 : index
    %54 = vector.load %arg7[%c3_62, %c0_63, %c0_64, %c0_65] : memref<5x2x12x32xf32, #tpu.memory_space<vmem>>, vector<1x2x8x32xf32>
    %55 = vector.shape_cast %54 : vector<1x2x8x32xf32> to vector<2x8x32xf32>
    %56 = vector.broadcast %53 : f32 to vector<2x8x32xf32>
    %57 = arith.mulf %56, %55 : vector<2x8x32xf32>
    %58 = arith.addf %52, %57 : vector<2x8x32xf32>
    %c4_66 = arith.constant 4 : index
    %59 = memref.load %arg3[%c4_66] : memref<25xf32, #tpu.memory_space<smem>>
    %c4_67 = arith.constant 4 : index
    %c0_68 = arith.constant 0 : index
    %c0_69 = arith.constant 0 : index
    %c0_70 = arith.constant 0 : index
    %60 = vector.load %arg7[%c4_67, %c0_68, %c0_69, %c0_70] : memref<5x2x12x32xf32, #tpu.memory_space<vmem>>, vector<1x2x8x32xf32>
    %61 = vector.shape_cast %60 : vector<1x2x8x32xf32> to vector<2x8x32xf32>
    %62 = vector.broadcast %59 : f32 to vector<2x8x32xf32>
    %63 = arith.mulf %62, %61 : vector<2x8x32xf32>
    %64 = arith.addf %58, %63 : vector<2x8x32xf32>
    %c5 = arith.constant 5 : index
    %65 = memref.load %arg3[%c5] : memref<25xf32, #tpu.memory_space<smem>>
    %c0_71 = arith.constant 0 : index
    %c0_72 = arith.constant 0 : index
    %c1_73 = arith.constant 1 : index
    %c0_74 = arith.constant 0 : index
    %66 = vector.load %arg7[%c0_71, %c0_72, %c1_73, %c0_74] : memref<5x2x12x32xf32, #tpu.memory_space<vmem>>, vector<1x2x8x32xf32>
    %67 = vector.shape_cast %66 : vector<1x2x8x32xf32> to vector<2x8x32xf32>
    %68 = vector.broadcast %65 : f32 to vector<2x8x32xf32>
    %69 = arith.mulf %68, %67 : vector<2x8x32xf32>
    %70 = arith.addf %64, %69 : vector<2x8x32xf32>
    %c6 = arith.constant 6 : index
    %71 = memref.load %arg3[%c6] : memref<25xf32, #tpu.memory_space<smem>>
    %c1_75 = arith.constant 1 : index
    %c0_76 = arith.constant 0 : index
    %c1_77 = arith.constant 1 : index
    %c0_78 = arith.constant 0 : index
    %72 = vector.load %arg7[%c1_75, %c0_76, %c1_77, %c0_78] : memref<5x2x12x32xf32, #tpu.memory_space<vmem>>, vector<1x2x8x32xf32>
    %73 = vector.shape_cast %72 : vector<1x2x8x32xf32> to vector<2x8x32xf32>
    %74 = vector.broadcast %71 : f32 to vector<2x8x32xf32>
    %75 = arith.mulf %74, %73 : vector<2x8x32xf32>
    %76 = arith.addf %70, %75 : vector<2x8x32xf32>
    %c7 = arith.constant 7 : index
    %77 = memref.load %arg3[%c7] : memref<25xf32, #tpu.memory_space<smem>>
    %c2_79 = arith.constant 2 : index
    %c0_80 = arith.constant 0 : index
    %c1_81 = arith.constant 1 : index
    %c0_82 = arith.constant 0 : index
    %78 = vector.load %arg7[%c2_79, %c0_80, %c1_81, %c0_82] : memref<5x2x12x32xf32, #tpu.memory_space<vmem>>, vector<1x2x8x32xf32>
    %79 = vector.shape_cast %78 : vector<1x2x8x32xf32> to vector<2x8x32xf32>
    %80 = vector.broadcast %77 : f32 to vector<2x8x32xf32>
    %81 = arith.mulf %80, %79 : vector<2x8x32xf32>
    %82 = arith.addf %76, %81 : vector<2x8x32xf32>
    %c8 = arith.constant 8 : index
    %83 = memref.load %arg3[%c8] : memref<25xf32, #tpu.memory_space<smem>>
    %c3_83 = arith.constant 3 : index
    %c0_84 = arith.constant 0 : index
    %c1_85 = arith.constant 1 : index
    %c0_86 = arith.constant 0 : index
    %84 = vector.load %arg7[%c3_83, %c0_84, %c1_85, %c0_86] : memref<5x2x12x32xf32, #tpu.memory_space<vmem>>, vector<1x2x8x32xf32>
    %85 = vector.shape_cast %84 : vector<1x2x8x32xf32> to vector<2x8x32xf32>
    %86 = vector.broadcast %83 : f32 to vector<2x8x32xf32>
    %87 = arith.mulf %86, %85 : vector<2x8x32xf32>
    %88 = arith.addf %82, %87 : vector<2x8x32xf32>
    %c9 = arith.constant 9 : index
    %89 = memref.load %arg3[%c9] : memref<25xf32, #tpu.memory_space<smem>>
    %c4_87 = arith.constant 4 : index
    %c0_88 = arith.constant 0 : index
    %c1_89 = arith.constant 1 : index
    %c0_90 = arith.constant 0 : index
    %90 = vector.load %arg7[%c4_87, %c0_88, %c1_89, %c0_90] : memref<5x2x12x32xf32, #tpu.memory_space<vmem>>, vector<1x2x8x32xf32>
    %91 = vector.shape_cast %90 : vector<1x2x8x32xf32> to vector<2x8x32xf32>
    %92 = vector.broadcast %89 : f32 to vector<2x8x32xf32>
    %93 = arith.mulf %92, %91 : vector<2x8x32xf32>
    %94 = arith.addf %88, %93 : vector<2x8x32xf32>
    %c10 = arith.constant 10 : index
    %95 = memref.load %arg3[%c10] : memref<25xf32, #tpu.memory_space<smem>>
    %c0_91 = arith.constant 0 : index
    %c0_92 = arith.constant 0 : index
    %c2_93 = arith.constant 2 : index
    %c0_94 = arith.constant 0 : index
    %96 = vector.load %arg7[%c0_91, %c0_92, %c2_93, %c0_94] : memref<5x2x12x32xf32, #tpu.memory_space<vmem>>, vector<1x2x8x32xf32>
    %97 = vector.shape_cast %96 : vector<1x2x8x32xf32> to vector<2x8x32xf32>
    %98 = vector.broadcast %95 : f32 to vector<2x8x32xf32>
    %99 = arith.mulf %98, %97 : vector<2x8x32xf32>
    %100 = arith.addf %94, %99 : vector<2x8x32xf32>
    %c11 = arith.constant 11 : index
    %101 = memref.load %arg3[%c11] : memref<25xf32, #tpu.memory_space<smem>>
    %c1_95 = arith.constant 1 : index
    %c0_96 = arith.constant 0 : index
    %c2_97 = arith.constant 2 : index
    %c0_98 = arith.constant 0 : index
    %102 = vector.load %arg7[%c1_95, %c0_96, %c2_97, %c0_98] : memref<5x2x12x32xf32, #tpu.memory_space<vmem>>, vector<1x2x8x32xf32>
    %103 = vector.shape_cast %102 : vector<1x2x8x32xf32> to vector<2x8x32xf32>
    %104 = vector.broadcast %101 : f32 to vector<2x8x32xf32>
    %105 = arith.mulf %104, %103 : vector<2x8x32xf32>
    %106 = arith.addf %100, %105 : vector<2x8x32xf32>
    %c12 = arith.constant 12 : index
    %107 = memref.load %arg3[%c12] : memref<25xf32, #tpu.memory_space<smem>>
    %c2_99 = arith.constant 2 : index
    %c0_100 = arith.constant 0 : index
    %c2_101 = arith.constant 2 : index
    %c0_102 = arith.constant 0 : index
    %108 = vector.load %arg7[%c2_99, %c0_100, %c2_101, %c0_102] : memref<5x2x12x32xf32, #tpu.memory_space<vmem>>, vector<1x2x8x32xf32>
    %109 = vector.shape_cast %108 : vector<1x2x8x32xf32> to vector<2x8x32xf32>
    %110 = vector.broadcast %107 : f32 to vector<2x8x32xf32>
    %111 = arith.mulf %110, %109 : vector<2x8x32xf32>
    %112 = arith.addf %106, %111 : vector<2x8x32xf32>
    %c13 = arith.constant 13 : index
    %113 = memref.load %arg3[%c13] : memref<25xf32, #tpu.memory_space<smem>>
    %c3_103 = arith.constant 3 : index
    %c0_104 = arith.constant 0 : index
    %c2_105 = arith.constant 2 : index
    %c0_106 = arith.constant 0 : index
    %114 = vector.load %arg7[%c3_103, %c0_104, %c2_105, %c0_106] : memref<5x2x12x32xf32, #tpu.memory_space<vmem>>, vector<1x2x8x32xf32>
    %115 = vector.shape_cast %114 : vector<1x2x8x32xf32> to vector<2x8x32xf32>
    %116 = vector.broadcast %113 : f32 to vector<2x8x32xf32>
    %117 = arith.mulf %116, %115 : vector<2x8x32xf32>
    %118 = arith.addf %112, %117 : vector<2x8x32xf32>
    %c14 = arith.constant 14 : index
    %119 = memref.load %arg3[%c14] : memref<25xf32, #tpu.memory_space<smem>>
    %c4_107 = arith.constant 4 : index
    %c0_108 = arith.constant 0 : index
    %c2_109 = arith.constant 2 : index
    %c0_110 = arith.constant 0 : index
    %120 = vector.load %arg7[%c4_107, %c0_108, %c2_109, %c0_110] : memref<5x2x12x32xf32, #tpu.memory_space<vmem>>, vector<1x2x8x32xf32>
    %121 = vector.shape_cast %120 : vector<1x2x8x32xf32> to vector<2x8x32xf32>
    %122 = vector.broadcast %119 : f32 to vector<2x8x32xf32>
    %123 = arith.mulf %122, %121 : vector<2x8x32xf32>
    %124 = arith.addf %118, %123 : vector<2x8x32xf32>
    %c15 = arith.constant 15 : index
    %125 = memref.load %arg3[%c15] : memref<25xf32, #tpu.memory_space<smem>>
    %c0_111 = arith.constant 0 : index
    %c0_112 = arith.constant 0 : index
    %c3_113 = arith.constant 3 : index
    %c0_114 = arith.constant 0 : index
    %126 = vector.load %arg7[%c0_111, %c0_112, %c3_113, %c0_114] : memref<5x2x12x32xf32, #tpu.memory_space<vmem>>, vector<1x2x8x32xf32>
    %127 = vector.shape_cast %126 : vector<1x2x8x32xf32> to vector<2x8x32xf32>
    %128 = vector.broadcast %125 : f32 to vector<2x8x32xf32>
    %129 = arith.mulf %128, %127 : vector<2x8x32xf32>
    %130 = arith.addf %124, %129 : vector<2x8x32xf32>
    %c16 = arith.constant 16 : index
    %131 = memref.load %arg3[%c16] : memref<25xf32, #tpu.memory_space<smem>>
    %c1_115 = arith.constant 1 : index
    %c0_116 = arith.constant 0 : index
    %c3_117 = arith.constant 3 : index
    %c0_118 = arith.constant 0 : index
    %132 = vector.load %arg7[%c1_115, %c0_116, %c3_117, %c0_118] : memref<5x2x12x32xf32, #tpu.memory_space<vmem>>, vector<1x2x8x32xf32>
    %133 = vector.shape_cast %132 : vector<1x2x8x32xf32> to vector<2x8x32xf32>
    %134 = vector.broadcast %131 : f32 to vector<2x8x32xf32>
    %135 = arith.mulf %134, %133 : vector<2x8x32xf32>
    %136 = arith.addf %130, %135 : vector<2x8x32xf32>
    %c17 = arith.constant 17 : index
    %137 = memref.load %arg3[%c17] : memref<25xf32, #tpu.memory_space<smem>>
    %c2_119 = arith.constant 2 : index
    %c0_120 = arith.constant 0 : index
    %c3_121 = arith.constant 3 : index
    %c0_122 = arith.constant 0 : index
    %138 = vector.load %arg7[%c2_119, %c0_120, %c3_121, %c0_122] : memref<5x2x12x32xf32, #tpu.memory_space<vmem>>, vector<1x2x8x32xf32>
    %139 = vector.shape_cast %138 : vector<1x2x8x32xf32> to vector<2x8x32xf32>
    %140 = vector.broadcast %137 : f32 to vector<2x8x32xf32>
    %141 = arith.mulf %140, %139 : vector<2x8x32xf32>
    %142 = arith.addf %136, %141 : vector<2x8x32xf32>
    %c18 = arith.constant 18 : index
    %143 = memref.load %arg3[%c18] : memref<25xf32, #tpu.memory_space<smem>>
    %c3_123 = arith.constant 3 : index
    %c0_124 = arith.constant 0 : index
    %c3_125 = arith.constant 3 : index
    %c0_126 = arith.constant 0 : index
    %144 = vector.load %arg7[%c3_123, %c0_124, %c3_125, %c0_126] : memref<5x2x12x32xf32, #tpu.memory_space<vmem>>, vector<1x2x8x32xf32>
    %145 = vector.shape_cast %144 : vector<1x2x8x32xf32> to vector<2x8x32xf32>
    %146 = vector.broadcast %143 : f32 to vector<2x8x32xf32>
    %147 = arith.mulf %146, %145 : vector<2x8x32xf32>
    %148 = arith.addf %142, %147 : vector<2x8x32xf32>
    %c19 = arith.constant 19 : index
    %149 = memref.load %arg3[%c19] : memref<25xf32, #tpu.memory_space<smem>>
    %c4_127 = arith.constant 4 : index
    %c0_128 = arith.constant 0 : index
    %c3_129 = arith.constant 3 : index
    %c0_130 = arith.constant 0 : index
    %150 = vector.load %arg7[%c4_127, %c0_128, %c3_129, %c0_130] : memref<5x2x12x32xf32, #tpu.memory_space<vmem>>, vector<1x2x8x32xf32>
    %151 = vector.shape_cast %150 : vector<1x2x8x32xf32> to vector<2x8x32xf32>
    %152 = vector.broadcast %149 : f32 to vector<2x8x32xf32>
    %153 = arith.mulf %152, %151 : vector<2x8x32xf32>
    %154 = arith.addf %148, %153 : vector<2x8x32xf32>
    %c20 = arith.constant 20 : index
    %155 = memref.load %arg3[%c20] : memref<25xf32, #tpu.memory_space<smem>>
    %c0_131 = arith.constant 0 : index
    %c0_132 = arith.constant 0 : index
    %c4_133 = arith.constant 4 : index
    %c0_134 = arith.constant 0 : index
    %156 = vector.load %arg7[%c0_131, %c0_132, %c4_133, %c0_134] : memref<5x2x12x32xf32, #tpu.memory_space<vmem>>, vector<1x2x8x32xf32>
    %157 = vector.shape_cast %156 : vector<1x2x8x32xf32> to vector<2x8x32xf32>
    %158 = vector.broadcast %155 : f32 to vector<2x8x32xf32>
    %159 = arith.mulf %158, %157 : vector<2x8x32xf32>
    %160 = arith.addf %154, %159 : vector<2x8x32xf32>
    %c21 = arith.constant 21 : index
    %161 = memref.load %arg3[%c21] : memref<25xf32, #tpu.memory_space<smem>>
    %c1_135 = arith.constant 1 : index
    %c0_136 = arith.constant 0 : index
    %c4_137 = arith.constant 4 : index
    %c0_138 = arith.constant 0 : index
    %162 = vector.load %arg7[%c1_135, %c0_136, %c4_137, %c0_138] : memref<5x2x12x32xf32, #tpu.memory_space<vmem>>, vector<1x2x8x32xf32>
    %163 = vector.shape_cast %162 : vector<1x2x8x32xf32> to vector<2x8x32xf32>
    %164 = vector.broadcast %161 : f32 to vector<2x8x32xf32>
    %165 = arith.mulf %164, %163 : vector<2x8x32xf32>
    %166 = arith.addf %160, %165 : vector<2x8x32xf32>
    %c22 = arith.constant 22 : index
    %167 = memref.load %arg3[%c22] : memref<25xf32, #tpu.memory_space<smem>>
    %c2_139 = arith.constant 2 : index
    %c0_140 = arith.constant 0 : index
    %c4_141 = arith.constant 4 : index
    %c0_142 = arith.constant 0 : index
    %168 = vector.load %arg7[%c2_139, %c0_140, %c4_141, %c0_142] : memref<5x2x12x32xf32, #tpu.memory_space<vmem>>, vector<1x2x8x32xf32>
    %169 = vector.shape_cast %168 : vector<1x2x8x32xf32> to vector<2x8x32xf32>
    %170 = vector.broadcast %167 : f32 to vector<2x8x32xf32>
    %171 = arith.mulf %170, %169 : vector<2x8x32xf32>
    %172 = arith.addf %166, %171 : vector<2x8x32xf32>
    %c23 = arith.constant 23 : index
    %173 = memref.load %arg3[%c23] : memref<25xf32, #tpu.memory_space<smem>>
    %c3_143 = arith.constant 3 : index
    %c0_144 = arith.constant 0 : index
    %c4_145 = arith.constant 4 : index
    %c0_146 = arith.constant 0 : index
    %174 = vector.load %arg7[%c3_143, %c0_144, %c4_145, %c0_146] : memref<5x2x12x32xf32, #tpu.memory_space<vmem>>, vector<1x2x8x32xf32>
    %175 = vector.shape_cast %174 : vector<1x2x8x32xf32> to vector<2x8x32xf32>
    %176 = vector.broadcast %173 : f32 to vector<2x8x32xf32>
    %177 = arith.mulf %176, %175 : vector<2x8x32xf32>
    %178 = arith.addf %172, %177 : vector<2x8x32xf32>
    %c24 = arith.constant 24 : index
    %179 = memref.load %arg3[%c24] : memref<25xf32, #tpu.memory_space<smem>>
    %c4_147 = arith.constant 4 : index
    %c0_148 = arith.constant 0 : index
    %c4_149 = arith.constant 4 : index
    %c0_150 = arith.constant 0 : index
    %180 = vector.load %arg7[%c4_147, %c0_148, %c4_149, %c0_150] : memref<5x2x12x32xf32, #tpu.memory_space<vmem>>, vector<1x2x8x32xf32>
    %181 = vector.shape_cast %180 : vector<1x2x8x32xf32> to vector<2x8x32xf32>
    %182 = vector.broadcast %179 : f32 to vector<2x8x32xf32>
    %183 = arith.mulf %182, %181 : vector<2x8x32xf32>
    %184 = arith.addf %178, %183 : vector<2x8x32xf32>
    %c2_151 = arith.constant 2 : index
    %c0_152 = arith.constant 0 : index
    %c2_153 = arith.constant 2 : index
    %c0_154 = arith.constant 0 : index
    %185 = vector.load %arg7[%c2_151, %c0_152, %c2_153, %c0_154] : memref<5x2x12x32xf32, #tpu.memory_space<vmem>>, vector<1x2x8x32xf32>
    %186 = vector.shape_cast %185 : vector<1x2x8x32xf32> to vector<2x8x32xf32>
    %c0_155 = arith.constant 0 : index
    %187 = memref.load %arg4[%c0_155] : memref<1xf32, #tpu.memory_space<smem>>
    %188 = vector.broadcast %187 : f32 to vector<2x8x32xf32>
    %189 = arith.addf %184, %188 : vector<2x8x32xf32>
    %cst_156 = arith.constant 0.000000e+00 : f32
    %190 = vector.broadcast %cst_156 : f32 to vector<2x8x32xf32>
    %191 = arith.maximumf %189, %190 : vector<2x8x32xf32>
    %192 = arith.addf %191, %186 : vector<2x8x32xf32>
    %c0_157 = arith.constant 0 : index
    %c0_158 = arith.constant 0 : index
    %c0_159 = arith.constant 0 : index
    %193 = vector.load %arg5[%c0_157, %c0_158, %c0_159] : memref<2x8x32xf32, #tpu.memory_space<vmem>>, vector<2x8x32xf32>
    tpu.vector_store %arg5[%c0_157, %c0_158, %c0_159], %192 {strides = array<i32>} : memref<2x8x32xf32, #tpu.memory_space<vmem>>, vector<2x8x32xf32>,
    return
  }
}

</mosaic_0001>

<bundles_post_ra>
// kernel: tpu_custom_call.1
= control target key start
LH: loop header
LB: loop body
LE: loop exit
PB: predicated region body
PF: predicated region fallthrough
CT: control target
= control target key end

     0   :  { %11 = vsyncpa [#allocation6], 0  ;;  %s804_s0 = inlined_call_operand.hbm [shape: f32[16,16], index: 0, kind: input, shape index: {}]   ;;  %s805_s1 = inlined_call_operand.hbm [shape: f32[16,36], index: 1, kind: input, shape index: {}]   ;;  %s806_s2 = inlined_call_operand.vmem [shape: f32[1,36], index: 2, kind: input, shape index: {}]   ;;  %s807_s3 = inlined_call_operand.vmem [shape: f32[25], index: 3, kind: input, shape index: {}]   ;;  %s808_s4 = inlined_call_operand.<no memory space> [shape: f32[1], index: 4, kind: input, shape index: {}]   ;;  %s809_s5 = inlined_call_operand.hbm [shape: f32[2,8,32], index: 5, kind: output, shape index: {}]  }
   0x1   :  { %12 = vsyncpa [#allocation10], 0 }
   0x2   :  { %13 = vsyncpa [#allocation8], 0 }
   0x3   :  { %14 = vsyncpa [#allocation7], 0  ;;  %s631_s18 = smov [#allocation5]  }
   0x4   :  { %s20_s19 = sshll.u32 %s631_s18, 4  ;;  %s21_s19 = int_to_ptr.vmem [resolvable:$true] %s20_s19 }
   0x5   :  { %s559_s20 = scalar_lea.vmem %s21_s19, 256  ;;  %p564_p1 = scmp.lt.s32.totalorder %s21_s19, %s21_s19 }
   0x6   :  { %p560_p0 = scmp.ne.s32.totalorder %s21_s19, %s559_s20  ;;  %p565_p2 = scmp.lt.s32.totalorder %s559_s20, %s559_s20 }
   0x8   :  { %p566_p3 = por %p565_p2, %p564_p1 }
   0xa   :  { %p567_p4 = pnand %p566_p3, %p560_p0 }
   0xc   :  { %570 = shalt.err (!%p567_p4)
}
   0xd   :  { %s632_s21 = smov 128   ;;  %s633_s22 = smov 8  }
   0xe   :  { %26 = dma.hbm_to_vmem [thread:$0]  %s804_s0, 256, %s21_s19, [#allocation6], %s632_s21, %s632_s21, %s633_s22  }
   0xf   :  { %s634_s25 = smov [#allocation9]   ;;  %s47_s29 = sshll.u32 %s807_s3, 4  ;;  %s48_s29 = int_to_ptr.vmem [resolvable:$true] %s47_s29 }
  0x10   :  { %s32_s26 = sshll.u32 %s634_s25, 4  ;;  %s33_s26 = int_to_ptr.vmem [resolvable:$true] %s32_s26 }
  0x11   :  { %s579_s30 = scalar_lea.vmem %s33_s26, 256  ;;  %p584_p6 = scmp.lt.s32.totalorder %s33_s26, %s33_s26 }
  0x12   :  { %p580_p5 = scmp.ne.s32.totalorder %s33_s26, %s579_s30  ;;  %p585_p7 = scmp.lt.s32.totalorder %s579_s30, %s579_s30 }
  0x14   :  { %p586_p8 = por %p585_p7, %p584_p6 }
  0x16   :  { %p587_p9 = pnand %p586_p8, %p580_p5 }
  0x18   :  { %590 = shalt.err (!%p587_p9)
}
  0x19   :  { %38 = dma.hbm_to_vmem [thread:$0]  %s805_s1, 256, %s33_s26, [#allocation10], %s632_s21, %s632_s21, %s633_s22  }
  0x1a   :  { %s591_s7 = scalar_lea.vmem %s48_s29, 16  ;;  %p596_p11 = scmp.lt.s32.totalorder %s48_s29, %s48_s29 }
  0x1b   :  { %p592_p10 = scmp.ne.s32.totalorder %s48_s29, %s591_s7  ;;  %p597_p12 = scmp.lt.s32.totalorder %s591_s7, %s591_s7 }
  0x1d   :  { %p598_p13 = por %p597_p12, %p596_p11 }
  0x1f   :  { %p599_p0 = pnand %p598_p13, %p592_p10 }
  0x21   :  { %602 = shalt.err (!%p599_p0)
}
  0x22   :  { %s635_s3 = smov [#allocation11]  }
  0x23   :  { %50 = dma.vmem_to_smem %s48_s29, 16, %s635_s3, [#allocation8]  }
  0x24   :  { %623 = dma.done.wait [#allocation6], 256  }
  0x25   :  { %624 = vsyncadd [#allocation6], 4294967040 }
  0x26   :  { %625 = dma.done.wait [#allocation10], 256  }
  0x27   :  { %626 = vsyncadd [#allocation10], 4294967040 }
  0x28   :  { %627 = dma.done.wait [#allocation8], 16  }
  0x29   :  { %628 = vsyncadd [#allocation8], 4294967280 }
  0x2a   :  { %62 = sfence }
  0x2b   :  { %v66_v0 = vld [vmem:[#allocation9 + $0x8] sm:$0xff]  ;;  %v65_v1 = vld [vmem:[#allocation9] sm:$0xff]  ;;  %v63_v2 = vld [vmem:[#allocation5] sm:$0xff]  ;;  %vm74_vm0 = vcmask 130048   ;;  %vm156_vm1 = vcmask 293888   ;;  %vm158_vm2 = vcmask 289792  }
  0x2c   :  { %533 = vmatprep.subr.mxu0 %v66_v0  ;;  %537 = vmatprep.mubr.msk.f32.mxu0 %vm74_vm0, %v63_v2  ;;  %v64_v3 = vld [vmem:[#allocation5 + $0x8] sm:$0xff]  ;;  %v636_v4 = vmov 0.0   ;;  %v502_v5 = vld [vmem:[%s806_s2] ss:$0 sm:$0xff]  ;;  %vm169_vm3 = vcmask 261120   ;;  %vm171_vm4 = vcmask 257024  }
  0x2d   :  { %534 = vmatpush3.msra.mxu0 %v66_v0  ;;  %157 = vst.msk [vmem:[#allocation2] sm:$0xff] %vm156_vm1, %v636_v4  ;;  %160 = vst.msk [vmem:[#allocation2 + $0x10] sm:$0xff] %vm156_vm1, %v636_v4  ;;  %s637_s9 = smov 126   ;;  %s638_s10 = smov 127  }
  0x2e   :  { %535 = vmatprep.subr.mxu0 %v65_v1  ;;  %161 = vst.msk [vmem:[#allocation2 + $0x18] sm:$0xf] %vm158_vm2, %v636_v4  ;;  %159 = vst.msk [vmem:[#allocation2 + $0x8] sm:$0xf] %vm158_vm2, %v636_v4  ;;  %s639_s2 = smov 125   ;;  %s640_s11 = smov 124  }
  0x2f   :  { %536 = vmatpush3.msra.mxu0 %v65_v1  ;;  %s696_s12 = sld [smem:[#allocation11 + $0x1]] }
  0x30   :  { %538 = vmatmul.mubr.msk.f32.vlgmr.msra.gmra.mxu0 %vm74_vm0, %v64_v3  ;;  %s698_s13 = sld [smem:[#allocation11]] }
  0x31   :  { %s702_s14 = sld [smem:[#allocation11 + $0x2]] }
  0x32   :  { %s707_s15 = sld [smem:[#allocation11 + $0x3]] }
  0x33   :  { %s710_s16 = sld [smem:[#allocation11 + $0x4]] }
  0x34   :  { %s717_s17 = sld [smem:[#allocation11 + $0x5]] }
  0x35   :  { %v284_v29 = vstv %s696_s12  ;;  %s720_s18 = sld [smem:[#allocation11 + $0x6]]  ;;  %s641_s12 = smov [#allocation12]  }
  0x36   :  { %v278_v33 = vstv %s698_s13  ;;  %s723_s19 = sld [smem:[#allocation11 + $0x7]]  ;;  %s488_s13 = sshll.u32 %s641_s12, 4  ;;  %s489_s13 = int_to_ptr.vmem [resolvable:$true] %s488_s13 }
  0x37   :  { %v292_v41 = vstv %s702_s14  ;;  %s727_s20 = sld [smem:[#allocation11 + $0x8]]  ;;  %s603_s14 = scalar_lea.vmem %s489_s13, 256 }
  0x38   :  { %v300_v45 = vstv %s707_s15  ;;  %s733_s23 = sld [smem:[#allocation11 + $0x9]]  ;;  %p604_p1 = scmp.ne.s32.totalorder %s489_s13, %s603_s14 }
  0x39   :  { %v308_v53 = vstv %s710_s16  ;;  %s736_s24 = sld [smem:[#allocation11 + $0xa]]  ;;  %p608_p2 = scmp.lt.s32.totalorder %s489_s13, %s489_s13 }
  0x3a   :  { %s741_s25 = sld [smem:[#allocation11 + $0xb]]  ;;  %p609_p3 = scmp.lt.s32.totalorder %s603_s14, %s603_s14 }
  0x3b   :  { %s743_s26 = sld [smem:[#allocation11 + $0xc]] }
  0x3c   :  { %s746_s27 = sld [smem:[#allocation11 + $0xd]]  ;;  %p610_p4 = por %p609_p3, %p608_p2 }
  0x3d   :  { %s749_s28 = sld [smem:[#allocation11 + $0xe]] }
  0x3e   :  { %s752_s29 = sld [smem:[#allocation11 + $0xf]]  ;;  %p611_p5 = pnand %p610_p4, %p604_p1 }
  0x3f   :  { %s759_s30 = sld [smem:[#allocation11 + $0x10]] }
  0x40   :  { %s762_s6 = sld [smem:[#allocation11 + $0x11]] }
  0x41   :  { %s767_s0 = sld [smem:[#allocation11 + $0x12]] }
  0x42   :  { %s770_s7 = sld [smem:[#allocation11 + $0x13]] }
  0x43   :  { %s773_s3 = sld [smem:[#allocation11 + $0x14]] }
  0x44   :  { %s776_s1 = sld [smem:[#allocation11 + $0x15]] }
  0x45   :  { %s779_s8 = sld [smem:[#allocation11 + $0x16]] }
  0xf0   :  { %v539_v6 = vpop.f32.mrf.mxu0 }
  0xf1   :  { %v153_v7 = vadd.f32 %v539_v6, %v502_v5 }
  0xf2   :  { %v147_v8 = vpop.f32.mrf.mxu0 }
  0xf3   :  { %164 = vst.msk [vmem:[#allocation2 + $0x12] sm:$0xff] %vm156_vm1, %v153_v7  ;;  %v148_v9 = vadd.f32 %v502_v5, %v147_v8  ;;  %v316_v5 = vstv %s717_s17  ;;  %v324_v8 = vstv %s720_s18 }
  0xf5   :  { %162 = vst.msk [vmem:[#allocation2 + $0x2] sm:$0xff] %vm156_vm1, %v148_v9 }
  0xfa   :  { %v167_v10 = vld [vmem:[#allocation2 + $0x10] sm:$0xff]  ;;  %v168_v11 = vld [vmem:[#allocation2 + $0x18] sm:$0xf] }
  0xfb   :  { %212 = vrot.lane.b32.xlu1 %v167_v10, %s637_s9  ;;  %187 = vrot.lane.b32.xlu0 %v167_v10, %s638_s10  ;;  %173 = vst.msk [vmem:[#allocation3 + $0x10] sm:$0xff] %vm169_vm3, %v167_v10  ;;  %v178_v14 = vld [vmem:[#allocation2 + $0x18] sm:$0xf] }
  0xfc   :  { %174 = vst.msk [vmem:[#allocation3 + $0x18] sm:$0xf] %vm171_vm4, %v168_v11  ;;  %v165_v12 = vld [vmem:[#allocation2] sm:$0xff]  ;;  %v166_v13 = vld [vmem:[#allocation2 + $0x8] sm:$0xf] }
  0xfd   :  { %170 = vst.msk [vmem:[#allocation3] sm:$0xff] %vm169_vm3, %v165_v12  ;;  %v176_v15 = vld [vmem:[#allocation2 + $0x8] sm:$0xf]  ;;  %v203_v16 = vld [vmem:[#allocation2 + $0x18] sm:$0xf] }
  0xfe   :  { %172 = vst.msk [vmem:[#allocation3 + $0x8] sm:$0xf] %vm171_vm4, %v166_v13  ;;  %v201_v17 = vld [vmem:[#allocation2 + $0x8] sm:$0xf]  ;;  %v228_v18 = vld [vmem:[#allocation2 + $0x18] sm:$0xf] }
  0xff   :  { %237 = vrot.lane.b32.xlu1 %v167_v10, %s639_s2  ;;  %183 = vrot.lane.b32.xlu0 %v165_v12, %s638_s10  ;;  %v226_v19 = vld [vmem:[#allocation2 + $0x8] sm:$0xf]  ;;  %v253_v20 = vld [vmem:[#allocation2 + $0x18] sm:$0xf] }
 0x100   :  { %v251_v21 = vld [vmem:[#allocation2 + $0x8] sm:$0xf] }
 0x102   :  { %v277_v32 = vld [vmem:[#allocation3 + $0x10] sm:$0xff] }
 0x103   :  { %262 = vrot.lane.b32.xlu1 %v167_v10, %s640_s11  ;;  %233 = vrot.lane.b32.xlu0 %v165_v12, %s639_s2  ;;  %v280_v36 = vmul.f32 %v278_v33, %v277_v32  ;;  %v315_v4 = vld [vmem:[#allocation3 + $0x11] sm:$0xff]  ;;  %v348_v32 = vstv %s733_s23 }
 0x104   :  { %v276_v39 = vld [vmem:[#allocation3] sm:$0xff] }
 0x105   :  { %v279_v46 = vmul.f32 %v278_v33, %v276_v39  ;;  %v314_v0 = vld [vmem:[#allocation3 + $0x1] sm:$0xff] }
 0x106   :  { %v317_v11 = vmul.f32 %v316_v5, %v314_v0 }
 0x107   :  { %208 = vrot.lane.b32.xlu1 %v165_v12, %s637_s9  ;;  %258 = vrot.lane.b32.xlu0 %v165_v12, %s640_s11 }
 0x10b   :  { %189 = vrot.lane.b32.xlu1 %v178_v14, %s638_s10  ;;  %185 = vrot.lane.b32.xlu0 %v176_v15, %s638_s10  ;;  %s785_s10 = sld [smem:[#allocation11 + $0x18]] }
 0x10f   :  { %214 = vrot.lane.b32.xlu1 %v203_v16, %s637_s9  ;;  %210 = vrot.lane.b32.xlu0 %v201_v17, %s637_s9  ;;  %v332_v16 = vstv %s723_s19  ;;  %v318_v17 = vmul.f32 %v316_v5, %v315_v4  ;;  %s782_s9 = sld [smem:[#allocation11 + $0x17]] }
 0x113   :  { %239 = vrot.lane.b32.xlu1 %v228_v18, %s639_s2  ;;  %235 = vrot.lane.b32.xlu0 %v226_v19, %s639_s2 }
 0x117   :  { %264 = vrot.lane.b32.xlu1 %v253_v20, %s640_s11  ;;  %260 = vrot.lane.b32.xlu0 %v251_v21, %s640_s11  ;;  %v340_v21 = vstv %s727_s20 }
 0x16d   :  { %v213_v22 = vpop.permute.xlu1 %212  ;;  %v188_v23 = vpop.permute.xlu0 %187 }
 0x16e   :  { %223 = vst.msk [vmem:[#allocation3 + $0x50] sm:$0xff] %vm169_vm3, %v213_v22  ;;  %198 = vst.msk [vmem:[#allocation3 + $0x30] sm:$0xff] %vm169_vm3, %v188_v23 }
 0x171   :  { %v238_v24 = vpop.permute.xlu1 %237  ;;  %v184_v25 = vpop.permute.xlu0 %183 }
 0x172   :  { %248 = vst.msk [vmem:[#allocation3 + $0x70] sm:$0xff] %vm169_vm3, %v238_v24  ;;  %196 = vst.msk [vmem:[#allocation3 + $0x20] sm:$0xff] %vm169_vm3, %v184_v25 }
 0x175   :  { %v263_v26 = vpop.permute.xlu1 %262  ;;  %v234_v27 = vpop.permute.xlu0 %233  ;;  %v283_v28 = vld [vmem:[#allocation3 + $0x30] sm:$0xff] }
 0x176   :  { %273 = vst.msk [vmem:[#allocation3 + $0x90] sm:$0xff] %vm169_vm3, %v263_v26  ;;  %246 = vst.msk [vmem:[#allocation3 + $0x60] sm:$0xff] %vm169_vm3, %v234_v27  ;;  %v286_v34 = vmul.f32 %v284_v29, %v283_v28  ;;  %v291_v40 = vld [vmem:[#allocation3 + $0x50] sm:$0xff] }
 0x177   :  { %v294_v47 = vmul.f32 %v292_v41, %v291_v40 }
 0x178   :  { %v288_v43 = vadd.f32 %v286_v34, %v280_v36  ;;  %v355_v34 = vld [vmem:[#allocation3 + $0x12] sm:$0xff] }
 0x179   :  { %v209_v30 = vpop.permute.xlu1 %208  ;;  %v259_v31 = vpop.permute.xlu0 %258  ;;  %v282_v35 = vld [vmem:[#allocation3 + $0x20] sm:$0xff]  ;;  %v299_v44 = vld [vmem:[#allocation3 + $0x70] sm:$0xff] }
 0x17a   :  { %221 = vst.msk [vmem:[#allocation3 + $0x40] sm:$0xff] %vm169_vm3, %v209_v30  ;;  %271 = vst.msk [vmem:[#allocation3 + $0x80] sm:$0xff] %vm169_vm3, %v259_v31  ;;  %v285_v42 = vmul.f32 %v284_v29, %v282_v35  ;;  %v296_v56 = vadd.f32 %v294_v47, %v288_v43  ;;  %v302_v57 = vmul.f32 %v300_v45, %v299_v44 }
 0x17c   :  { %v287_v54 = vadd.f32 %v285_v42, %v279_v46  ;;  %v304_v2 = vadd.f32 %v302_v57, %v296_v56 }
 0x17d   :  { %v190_v37 = vpop.permute.xlu1 %189  ;;  %v186_v38 = vpop.permute.xlu0 %185  ;;  %v298_v51 = vld [vmem:[#allocation3 + $0x60] sm:$0xff]  ;;  %v307_v52 = vld [vmem:[#allocation3 + $0x90] sm:$0xff] }
 0x17e   :  { %199 = vst.msk [vmem:[#allocation3 + $0x38] sm:$0xf] %vm171_vm4, %v190_v37  ;;  %197 = vst.msk [vmem:[#allocation3 + $0x28] sm:$0xf] %vm171_vm4, %v186_v38  ;;  %v301_v60 = vmul.f32 %v300_v45, %v298_v51  ;;  %v310_v61 = vmul.f32 %v308_v53, %v307_v52  ;;  %v354_v37 = vld [vmem:[#allocation3 + $0x2] sm:$0xff]  ;;  %v356_v38 = vstv %s736_s24  ;;  %v364_v45 = vstv %s741_s25 }
 0x17f   :  { %v372_v52 = vstv %s743_s26 }
 0x180   :  { %v312_v10 = vadd.f32 %v310_v61, %v304_v2  ;;  %v388_v2 = vstv %s749_s28 }
 0x181   :  { %v215_v48 = vpop.permute.xlu1 %214  ;;  %v211_v49 = vpop.permute.xlu0 %210  ;;  %v290_v50 = vld [vmem:[#allocation3 + $0x40] sm:$0xff] }
 0x182   :  { %224 = vst.msk [vmem:[#allocation3 + $0x58] sm:$0xf] %vm171_vm4, %v215_v48  ;;  %222 = vst.msk [vmem:[#allocation3 + $0x48] sm:$0xf] %vm171_vm4, %v211_v49  ;;  %v293_v55 = vmul.f32 %v292_v41, %v290_v50  ;;  %v306_v58 = vld [vmem:[#allocation3 + $0x80] sm:$0xff]  ;;  %v320_v22 = vadd.f32 %v318_v17, %v312_v10  ;;  %v357_v48 = vmul.f32 %v356_v38, %v354_v37  ;;  %v428_v37 = vstv %s770_s7 }
 0x183   :  { %v309_v3 = vmul.f32 %v308_v53, %v306_v58  ;;  %v358_v49 = vmul.f32 %v356_v38, %v355_v34 }
 0x184   :  { %v295_v59 = vadd.f32 %v293_v55, %v287_v54 }
 0x185   :  { %v240_v62 = vpop.permute.xlu1 %239  ;;  %v236_v63 = vpop.permute.xlu0 %235  ;;  %v322_v6 = vld [vmem:[#allocation3 + $0x21] sm:$0xff]  ;;  %v323_v7 = vld [vmem:[#allocation3 + $0x31] sm:$0xff] }
 0x186   :  { %249 = vst.msk [vmem:[#allocation3 + $0x78] sm:$0xf] %vm171_vm4, %v240_v62  ;;  %247 = vst.msk [vmem:[#allocation3 + $0x68] sm:$0xf] %vm171_vm4, %v236_v63  ;;  %v303_v1 = vadd.f32 %v301_v60, %v295_v59  ;;  %v325_v19 = vmul.f32 %v324_v8, %v322_v6  ;;  %v326_v20 = vmul.f32 %v324_v8, %v323_v7  ;;  %v362_v43 = vld [vmem:[#allocation3 + $0x22] sm:$0xff]  ;;  %v363_v44 = vld [vmem:[#allocation3 + $0x32] sm:$0xff]  ;;  %v380_v59 = vstv %s746_s27 }
 0x187   :  { %v365_v55 = vmul.f32 %v364_v45, %v362_v43  ;;  %v366_v56 = vmul.f32 %v364_v45, %v363_v44  ;;  %v394_v7 = vld [vmem:[#allocation3 + $0x3] sm:$0xff]  ;;  %v395_v8 = vld [vmem:[#allocation3 + $0x13] sm:$0xff]  ;;  %v436_v44 = vstv %s773_s3 }
 0x188   :  { %v311_v9 = vadd.f32 %v309_v3, %v303_v1  ;;  %v328_v28 = vadd.f32 %v326_v20, %v320_v22  ;;  %v435_v43 = vld [vmem:[#allocation3 + $0x14] sm:$0xff] }
 0x189   :  { %v265_v12 = vpop.permute.xlu1 %264  ;;  %v261_v13 = vpop.permute.xlu0 %260  ;;  %v330_v14 = vld [vmem:[#allocation3 + $0x41] sm:$0xff]  ;;  %v331_v15 = vld [vmem:[#allocation3 + $0x51] sm:$0xff] }
 0x18a   :  { %274 = vst.msk [vmem:[#allocation3 + $0x98] sm:$0xf] %vm171_vm4, %v265_v12  ;;  %272 = vst.msk [vmem:[#allocation3 + $0x88] sm:$0xf] %vm171_vm4, %v261_v13  ;;  %v319_v18 = vadd.f32 %v317_v11, %v311_v9  ;;  %v333_v24 = vmul.f32 %v332_v16, %v330_v14  ;;  %v334_v25 = vmul.f32 %v332_v16, %v331_v15  ;;  %v754_v50 = vld [vmem:[#allocation3 + $0x42] sm:$0xff]  ;;  %v756_v51 = vld [vmem:[#allocation3 + $0x52] sm:$0xff]  ;;  %v396_v9 = vstv %s752_s29 }
 0x18b   :  { %v373_v62 = vmul.f32 %v372_v52, %v754_v50  ;;  %v374_v63 = vmul.f32 %v372_v52, %v756_v51  ;;  %v402_v14 = vld [vmem:[#allocation3 + $0x23] sm:$0xff]  ;;  %v403_v15 = vld [vmem:[#allocation3 + $0x33] sm:$0xff]  ;;  %v404_v16 = vstv %s759_s30  ;;  %v398_v20 = vmul.f32 %v396_v9, %v395_v8 }
 0x18c   :  { %v327_v23 = vadd.f32 %v325_v19, %v319_v18  ;;  %v336_v33 = vadd.f32 %v334_v25, %v328_v28  ;;  %v397_v19 = vmul.f32 %v396_v9, %v394_v7  ;;  %v411_v22 = vld [vmem:[#allocation3 + $0x53] sm:$0xff] }
 0x18d   :  { %v338_v26 = vld [vmem:[#allocation3 + $0x61] sm:$0xff]  ;;  %v339_v27 = vld [vmem:[#allocation3 + $0x71] sm:$0xff] }
 0x18e   :  { %v335_v29 = vadd.f32 %v333_v24, %v327_v23  ;;  %v341_v30 = vmul.f32 %v340_v21, %v338_v26  ;;  %v342_v31 = vmul.f32 %v340_v21, %v339_v27  ;;  %v378_v57 = vld [vmem:[#allocation3 + $0x62] sm:$0xff]  ;;  %v379_v58 = vld [vmem:[#allocation3 + $0x72] sm:$0xff]  ;;  %v412_v23 = vstv %s762_s6 }
 0x18f   :  { %v381_v5 = vmul.f32 %v380_v59, %v378_v57  ;;  %v382_v6 = vmul.f32 %v380_v59, %v379_v58  ;;  %v410_v21 = vld [vmem:[#allocation3 + $0x43] sm:$0xff]  ;;  %v405_v26 = vmul.f32 %v404_v16, %v402_v14  ;;  %v406_v27 = vmul.f32 %v404_v16, %v403_v15  ;;  %v443_v52 = vld [vmem:[#allocation3 + $0x34] sm:$0xff] }
 0x190   :  { %v343_v39 = vadd.f32 %v341_v30, %v335_v29  ;;  %v344_v40 = vadd.f32 %v342_v31, %v336_v33  ;;  %v418_v28 = vld [vmem:[#allocation3 + $0x63] sm:$0xff]  ;;  %v419_v29 = vld [vmem:[#allocation3 + $0x73] sm:$0xff]  ;;  %v420_v30 = vstv %s767_s0  ;;  %v413_v33 = vmul.f32 %v412_v23, %v410_v21 }
 0x191   :  { %v346_v35 = vld [vmem:[#allocation3 + $0x81] sm:$0xff]  ;;  %v347_v36 = vld [vmem:[#allocation3 + $0x91] sm:$0xff]  ;;  %v414_v34 = vmul.f32 %v412_v23, %v411_v22  ;;  %v438_v57 = vmul.f32 %v436_v44, %v435_v43 }
 0x192   :  { %v349_v41 = vmul.f32 %v348_v32, %v346_v35  ;;  %v350_v42 = vmul.f32 %v348_v32, %v347_v36  ;;  %v386_v0 = vld [vmem:[#allocation3 + $0x82] sm:$0xff]  ;;  %v387_v1 = vld [vmem:[#allocation3 + $0x92] sm:$0xff] }
 0x193   :  { %v389_v12 = vmul.f32 %v388_v2, %v386_v0  ;;  %v390_v13 = vmul.f32 %v388_v2, %v387_v1  ;;  %v426_v35 = vld [vmem:[#allocation3 + $0x83] sm:$0xff]  ;;  %v427_v36 = vld [vmem:[#allocation3 + $0x93] sm:$0xff] }
 0x194   :  { %v351_v46 = vadd.f32 %v349_v41, %v343_v39  ;;  %v352_v47 = vadd.f32 %v350_v42, %v344_v40  ;;  %v421_v40 = vmul.f32 %v420_v30, %v418_v28  ;;  %v422_v41 = vmul.f32 %v420_v30, %v419_v29  ;;  %v434_v42 = vld [vmem:[#allocation3 + $0x4] sm:$0xff]  ;;  %v451_v59 = vld [vmem:[#allocation3 + $0x54] sm:$0xff] }
 0x195   :  { %v450_v58 = vld [vmem:[#allocation3 + $0x44] sm:$0xff]  ;;  %v459_v2 = vld [vmem:[#allocation3 + $0x74] sm:$0xff] }
 0x196   :  { %v359_v53 = vadd.f32 %v357_v48, %v351_v46  ;;  %v360_v54 = vadd.f32 %v358_v49, %v352_v47  ;;  %v429_v47 = vmul.f32 %v428_v37, %v426_v35  ;;  %v430_v48 = vmul.f32 %v428_v37, %v427_v36  ;;  %v442_v49 = vld [vmem:[#allocation3 + $0x24] sm:$0xff]  ;;  %v467_v9 = vld [vmem:[#allocation3 + $0x94] sm:$0xff] }
 0x197   :  { %v458_v1 = vld [vmem:[#allocation3 + $0x64] sm:$0xff] }
 0x198   :  { %v367_v60 = vadd.f32 %v365_v55, %v359_v53  ;;  %v368_v61 = vadd.f32 %v366_v56, %v360_v54  ;;  %v444_v53 = vstv %s776_s1  ;;  %v437_v56 = vmul.f32 %v436_v44, %v434_v42  ;;  %v466_v8 = vld [vmem:[#allocation3 + $0x84] sm:$0xff] }
 0x199   :  { %v446_v0 = vmul.f32 %v444_v53, %v443_v52 }
 0x19a   :  { %v375_v3 = vadd.f32 %v373_v62, %v367_v60  ;;  %v376_v4 = vadd.f32 %v374_v63, %v368_v61  ;;  %v452_v60 = vstv %s779_s8  ;;  %v445_v63 = vmul.f32 %v444_v53, %v442_v49 }
 0x19b   :  { %v454_v7 = vmul.f32 %v452_v60, %v451_v59 }
 0x19c   :  { %v383_v10 = vadd.f32 %v381_v5, %v375_v3  ;;  %v384_v11 = vadd.f32 %v382_v6, %v376_v4  ;;  %v460_v3 = vstv %s782_s9  ;;  %v453_v6 = vmul.f32 %v452_v60, %v450_v58 }
 0x19d   :  { %v462_v14 = vmul.f32 %v460_v3, %v459_v2 }
 0x19e   :  { %v391_v17 = vadd.f32 %v389_v12, %v383_v10  ;;  %v392_v18 = vadd.f32 %v390_v13, %v384_v11  ;;  %v468_v10 = vstv %s785_s10  ;;  %v461_v13 = vmul.f32 %v460_v3, %v458_v1 }
 0x1a0   :  { %v399_v24 = vadd.f32 %v397_v19, %v391_v17  ;;  %v400_v25 = vadd.f32 %v398_v20, %v392_v18  ;;  %v469_v17 = vmul.f32 %v468_v10, %v466_v8  ;;  %v470_v18 = vmul.f32 %v468_v10, %v467_v9 }
 0x1a1   :  { %v474_v19 = vstv %s808_s4 }
 0x1a2   :  { %v407_v31 = vadd.f32 %v405_v26, %v399_v24  ;;  %v408_v32 = vadd.f32 %v406_v27, %v400_v25 }
 0x1a4   :  { %v415_v38 = vadd.f32 %v413_v33, %v407_v31  ;;  %v416_v39 = vadd.f32 %v414_v34, %v408_v32 }
 0x1a6   :  { %v423_v45 = vadd.f32 %v421_v40, %v415_v38  ;;  %v424_v46 = vadd.f32 %v422_v41, %v416_v39 }
 0x1a8   :  { %v431_v54 = vadd.f32 %v429_v47, %v423_v45  ;;  %v432_v55 = vadd.f32 %v430_v48, %v424_v46 }
 0x1aa   :  { %v439_v61 = vadd.f32 %v437_v56, %v431_v54  ;;  %v440_v62 = vadd.f32 %v438_v57, %v432_v55 }
 0x1ac   :  { %v447_v4 = vadd.f32 %v445_v63, %v439_v61  ;;  %v448_v5 = vadd.f32 %v446_v0, %v440_v62 }
 0x1ae   :  { %v455_v11 = vadd.f32 %v453_v6, %v447_v4  ;;  %v456_v12 = vadd.f32 %v454_v7, %v448_v5 }
 0x1b0   :  { %v463_v15 = vadd.f32 %v461_v13, %v455_v11  ;;  %v464_v16 = vadd.f32 %v462_v14, %v456_v12 }
 0x1b2   :  { %v471_v20 = vadd.f32 %v469_v17, %v463_v15  ;;  %v472_v21 = vadd.f32 %v470_v18, %v464_v16 }
 0x1b4   :  { %v475_v22 = vadd.f32 %v474_v19, %v471_v20  ;;  %v476_v23 = vadd.f32 %v474_v19, %v472_v21 }
 0x1b6   :  { %v477_v24 = vmax.f32 %v475_v22, 0.0  ;;  %v478_v25 = vmax.f32 %v476_v23, 0.0 }
 0x1b8   :  { %v479_v26 = vadd.f32 %v477_v24, %v754_v50  ;;  %v480_v27 = vadd.f32 %v478_v25, %v756_v51 }
 0x1ba   :  { %481 = vst.msk [vmem:[#allocation12] sm:$0xff] %vm169_vm3, %v479_v26  ;;  %482 = vst.msk [vmem:[#allocation12 + $0x8] sm:$0xff] %vm169_vm3, %v480_v27 }
 0x1bb   :  { %614 = shalt.err (!%p611_p5)
}
 0x1bc   :  { %494 = dma.vmem_to_hbm [thread:$0]  %s489_s13, 256, %s809_s5, [#allocation7], %s632_s21, %s632_s21, %s633_s22  }
 0x1bd   :  { %629 = dma.done.wait [#allocation7], 256  }
 0x1be   :  { %630 = vsyncadd [#allocation7], 4294967040 }
 0x1bf   :  { %498 = vsyncpa [#allocation6], 1 }
 0x1c0   :  { %499 = vsyncpa [#allocation10], 1 }
 0x1c1   :  { %500 = vsyncpa [#allocation7], 1 }
 0x1c2   :  { %501 = vsyncpa [#allocation8], 1 }

</bundles_post_ra>
